<compile_context>
chip_gen: v7x
topology: tpu7x:2x2x1
jax: 0.10.0
libtpu: 0.0.40
codegen_flags: <defaults>
</compile_context>

<pallas_src>
import jax
import jax.numpy as jnp
from jax import lax
from jax.experimental import pallas as pl
from jax.experimental.pallas import tpu as pltpu

_LANES = 128
_SUBLANES = 8
# ~1M elements => 4 MiB per f32 (sublane-padded) input block.
_MAX_BLOCK_ELEMS = 1 << 20
# 2 inputs x 2 buffers x 4 MiB + 4 MiB accumulator ~= 20 MiB; 40 MiB leaves
# headroom and is under physical VMEM on v5e/v6e (128 MiB) and v7x (64 MiB).
_VMEM_LIMIT_BYTES = 40 * 1024 * 1024


def _cdiv(a, b):
    return -(-a // b)


def _round_up(x, m):
    return _cdiv(x, m) * m


def _make_mse_sum_kernel(true_b, true_t, block_b, block_t, bps,
                         tile_axis, mask_rows, mask_cols, inv_n):
    """Builds the fused MSE kernel for one static tiling configuration."""

    def kernel(pred_ref, tgt_ref, out_ref, acc_ref):
        j = pl.program_id(1)  # reduction ("arbitrary") axis

        @pl.when(j == 0)
        def _init():
            acc_ref[...] = jnp.zeros_like(acc_ref)

        # Native-dtype loads; cast to f32 on the VPU (free vs. HBM roofline).
        pred = pred_ref[...].astype(jnp.float32)
        tgt = tgt_ref[...].astype(jnp.float32)
        diff = pred - tgt
        sq = diff * diff

        if mask_rows or mask_cols:
            # Zero out Pallas-padded garbage beyond the true (B, T) extent
            # in the tail block of the tiled axis.
            blk = pl.program_id(0) * bps + j
            mask = None
            if mask_cols:
                col0 = blk * block_t if tile_axis == 1 else 0
                cols = col0 + lax.broadcasted_iota(
                    jnp.int32, (block_b, block_t), 1)
                mask = cols < true_t
            if mask_rows:
                row0 = blk * block_b if tile_axis == 0 else 0
                rows = row0 + lax.broadcasted_iota(
                    jnp.int32, (block_b, block_t), 0)
                rmask = rows < true_b
                mask = rmask if mask is None else (mask & rmask)
            sq = jnp.where(mask, sq, 0.0)

        # Pure VPU accumulation, no relayout, no per-step cross-lane reduce.
        acc_ref[...] += sq

        @pl.when(j == bps - 1)
        def _finalize():
            # One cross-lane/sublane reduction per parallel split; scale by
            # 1/n here so the wrapper only needs a trivial sum over splits.
            total = jnp.sum(acc_ref[...]) * inv_n
            r = lax.broadcasted_iota(jnp.int32, (_SUBLANES, _LANES), 0)
            c = lax.broadcasted_iota(jnp.int32, (_SUBLANES, _LANES), 1)
            out_ref[...] = jnp.where((r == 0) & (c == 0), total, 0.0)

    return kernel


def energy_predictor_loss(outputs, targets, offset=1.0):
    """MSE loss between `outputs` (B, T) float and `targets` (B, T) int.

    `offset` is kept for API parity with the PyTorch module; it is unused in
    the forward pass (it only matters when building log-domain targets
    elsewhere in FastSpeech2).
    """
    del offset  # unused in forward, matching the PyTorch module exactly
    assert outputs.shape == targets.shape
    assert outputs.ndim == 2, "expected (B, T) inputs"
    B, T = outputs.shape
    n = B * T

    padded_b = _round_up(B, _SUBLANES)
    padded_t = _round_up(T, _LANES)

    if padded_b * padded_t <= _MAX_BLOCK_ELEMS:
        # Small-input fast path (the realistic FastSpeech2 case): one grid
        # step over the full arrays, full-extent block, no masking.
        tile_axis = -1
        block_b, block_t = B, T
        nb_total = 1
    elif padded_b * _LANES <= _MAX_BLOCK_ELEMS and T >= 2 * _LANES:
        # Tile the (long) frames axis in lane-aligned chunks.
        tile_axis = 1
        block_b = B
        block_t = max(_LANES, (_MAX_BLOCK_ELEMS // padded_b) // _LANES * _LANES)
        block_t = min(block_t, padded_t)
        nb_total = _cdiv(T, block_t)
    else:
        # Pathological shape for this module (huge B, short T): tile B.
        # 32-row alignment keeps bf16/int8 sublane packing unmasked.
        # TODO(synk): shapes with both huge B and huge T would exceed the
        # 4 MiB block target here; not reachable for FastSpeech2 losses.
        tile_axis = 0
        block_t = T
        block_b = max(32, (_MAX_BLOCK_ELEMS // padded_t) // 32 * 32)
        block_b = min(block_b, _round_up(B, 32))
        nb_total = _cdiv(B, block_b)

    # Split an even number of reduction blocks across a leading "parallel"
    # grid axis so v7x's two TensorCores each stream half of HBM; on 1-TC
    # chips this is just a reshaped (measured-free) sequential loop.
    if nb_total >= 2 and nb_total % 2 == 0:
        num_splits, bps = 2, nb_total // 2
    else:
        num_splits, bps = 1, nb_total

    mask_cols = (tile_axis == 1) and (T % block_t != 0)
    mask_rows = (tile_axis == 0) and (B % block_b != 0)

    if tile_axis == 1:
        def in_idx(p, j):
            return (0, p * bps + j)
    elif tile_axis == 0:
        def in_idx(p, j):
            return (p * bps + j, 0)
    else:
        def in_idx(p, j):
            return (0, 0)

    def out_idx(p, j):
        return (p, 0)

    kernel = _make_mse_sum_kernel(
        true_b=B, true_t=T, block_b=block_b, block_t=block_t, bps=bps,
        tile_axis=tile_axis, mask_rows=mask_rows, mask_cols=mask_cols,
        inv_n=1.0 / n)

    out = pl.pallas_call(
        kernel,
        out_shape=jax.ShapeDtypeStruct((num_splits * _SUBLANES, _LANES),
                                       jnp.float32),
        grid_spec=pltpu.PrefetchScalarGridSpec(
            num_scalar_prefetch=0,
            grid=(num_splits, bps),
            in_specs=[
                pl.BlockSpec((block_b, block_t), in_idx),
                pl.BlockSpec((block_b, block_t), in_idx),
            ],
            out_specs=pl.BlockSpec((_SUBLANES, _LANES), out_idx),
            scratch_shapes=[pltpu.VMEM((block_b, block_t), jnp.float32)],
        ),
        compiler_params=pltpu.CompilerParams(
            dimension_semantics=("parallel", "arbitrary"),
            vmem_limit_bytes=_VMEM_LIMIT_BYTES,
        ),
    )(outputs, targets)

    # (num_splits*8, 128) with exactly one nonzero entry per split (already
    # scaled by 1/n in-kernel); summing it is a trivial final op.
    return jnp.sum(out)


def energy_predictor_loss_ref(outputs, targets):
    """Pure-JAX reference (== nn.MSELoss()(outputs, targets.float()))."""
    diff = outputs.astype(jnp.float32) - targets.astype(jnp.float32)
    return jnp.mean(diff * diff)


if __name__ == "__main__":
    key = jax.random.PRNGKey(0)
    k1, k2, k3, k4, k5, k6 = jax.random.split(key, 6)

    # Typical FastSpeech2 energy-loss shapes: (batch, frames); predictions in
    # log domain (float), targets in linear domain (LongTensor-like ints).
    B, T = 2, 128
    outputs = jax.random.normal(k1, (B, T), dtype=jnp.float32)
    targets = jax.random.randint(k2, (B, T), minval=0, maxval=8, dtype=jnp.int32)
    loss = jax.block_until_ready(energy_predictor_loss(outputs, targets))
    ref = energy_predictor_loss_ref(outputs, targets)
    assert jnp.allclose(loss, ref, rtol=1e-5, atol=1e-6), (loss, ref)

    # Unaligned small case (T not a multiple of 128): single full-array block.
    B2, T2 = 3, 100
    outputs2 = jax.random.normal(k3, (B2, T2), dtype=jnp.float32)
    targets2 = jax.random.randint(k4, (B2, T2), minval=0, maxval=8, dtype=jnp.int32)
    loss2 = jax.block_until_ready(energy_predictor_loss(outputs2, targets2))
    ref2 = energy_predictor_loss_ref(outputs2, targets2)
    assert jnp.allclose(loss2, ref2, rtol=1e-5, atol=1e-6), (loss2, ref2)

    # Large case: exercises T-tiling, the 2-way "parallel" split across
    # TensorCores, and the in-kernel masking of the padded tail block.
    B3, T3 = 2, 500_000
    outputs3 = jax.random.normal(k5, (B3, T3), dtype=jnp.float32)
    targets3 = jax.random.randint(k6, (B3, T3), minval=0, maxval=8, dtype=jnp.int32)
    loss3 = jax.block_until_ready(energy_predictor_loss(outputs3, targets3))
    ref3 = energy_predictor_loss_ref(outputs3, targets3)
    assert jnp.allclose(loss3, ref3, rtol=1e-4, atol=1e-5), (loss3, ref3)

    print("KERNEL_OK")
</pallas_src>

<mosaic_0001>
module attributes {stable_mosaic.version = 11 : i64} {
  func.func @kernel(%arg0: i32, %arg1: i32, %arg2: memref<2x128xf32, #tpu.memory_space<vmem>>, %arg3: memref<2x128xi32, #tpu.memory_space<vmem>>, %arg4: memref<8x128xf32, #tpu.memory_space<vmem>>, %arg5: memref<2x128xf32, #tpu.memory_space<vmem>>) attributes {dimension_semantics = [#tpu.dimension_semantics<parallel>, #tpu.dimension_semantics<arbitrary>], iteration_bounds = array<i64: 1, 1>, scalar_prefetch = 0 : i64, scratch_operands = 1 : i64, tpu.core_type = #tpu.core_type<tc>, window_params = [{pipeline_mode = #tpu.pipeline_mode<synchronous>, transform_indices = @transform_0, window_bounds = array<i64: 2, 128>}, {pipeline_mode = #tpu.pipeline_mode<synchronous>, transform_indices = @transform_1, window_bounds = array<i64: 2, 128>}, {transform_indices = @transform_2, window_bounds = array<i64: 8, 128>}]} {
    %c0_i32 = arith.constant 0 : i32
    %0 = arith.cmpi eq, %arg1, %c0_i32 : i32
    %1 = arith.extui %0 : i1 to i32
    %c0_i32_0 = arith.constant 0 : i32
    %2 = arith.cmpi ne, %1, %c0_i32_0 : i32
    scf.if %2 {
      %cst = arith.constant 0.000000e+00 : f32
      %14 = vector.broadcast %cst : f32 to vector<2x128xf32>
      %c0_10 = arith.constant 0 : index
      %c0_11 = arith.constant 0 : index
      %15 = vector.load %arg5[%c0_10, %c0_11] : memref<2x128xf32, #tpu.memory_space<vmem>>, vector<2x128xf32>
      tpu.vector_store %arg5[%c0_10, %c0_11], %14 {strides = array<i32>} : memref<2x128xf32, #tpu.memory_space<vmem>>, vector<2x128xf32>,
    } else {
    }
    %c0 = arith.constant 0 : index
    %c0_1 = arith.constant 0 : index
    %3 = vector.load %arg2[%c0, %c0_1] : memref<2x128xf32, #tpu.memory_space<vmem>>, vector<2x128xf32>
    %c0_2 = arith.constant 0 : index
    %c0_3 = arith.constant 0 : index
    %4 = vector.load %arg3[%c0_2, %c0_3] : memref<2x128xi32, #tpu.memory_space<vmem>>, vector<2x128xi32>
    %5 = arith.sitofp %4 : vector<2x128xi32> to vector<2x128xf32>
    %6 = arith.subf %3, %5 : vector<2x128xf32>
    %7 = arith.mulf %6, %6 : vector<2x128xf32>
    %c0_4 = arith.constant 0 : index
    %c0_5 = arith.constant 0 : index
    %8 = vector.load %arg5[%c0_4, %c0_5] : memref<2x128xf32, #tpu.memory_space<vmem>>, vector<2x128xf32>
    %9 = arith.addf %8, %7 : vector<2x128xf32>
    %c0_6 = arith.constant 0 : index
    %c0_7 = arith.constant 0 : index
    %10 = vector.load %arg5[%c0_6, %c0_7] : memref<2x128xf32, #tpu.memory_space<vmem>>, vector<2x128xf32>
    tpu.vector_store %arg5[%c0_6, %c0_7], %9 {strides = array<i32>} : memref<2x128xf32, #tpu.memory_space<vmem>>, vector<2x128xf32>,
    %c0_i32_8 = arith.constant 0 : i32
    %11 = arith.cmpi eq, %arg1, %c0_i32_8 : i32
    %12 = arith.extui %11 : i1 to i32
    %c0_i32_9 = arith.constant 0 : i32
    %13 = arith.cmpi ne, %12, %c0_i32_9 : i32
    scf.if %13 {
      %c0_10 = arith.constant 0 : index
      %c0_11 = arith.constant 0 : index
      %14 = vector.load %arg5[%c0_10, %c0_11] : memref<2x128xf32, #tpu.memory_space<vmem>>, vector<2x128xf32>
      %15 = vector.shape_cast %14 : vector<2x128xf32> to vector<1x2x128xf32>
      %cst = arith.constant dense<0.000000e+00> : vector<1xf32>
      %16 = vector.multi_reduction <add>, %15, %cst [1, 2] : vector<1x2x128xf32> to vector<1xf32>
      %17 = vector.shape_cast %16 : vector<1xf32> to vector<1x1x1xf32>
      %18 = vector.extract %17[0, 0, 0] : f32 from vector<1x1x1xf32>
      %cst_12 = arith.constant 3.906250e-03 : f32
      %19 = arith.mulf %18, %cst_12 : f32
      %20 = tpu.iota {dimensions = array<i32: 0>} : vector<8x128xi32>
      %21 = tpu.iota {dimensions = array<i32: 1>} : vector<8x128xi32>
      %c0_i32_13 = arith.constant 0 : i32
      %22 = vector.broadcast %c0_i32_13 : i32 to vector<8x128xi32>
      %23 = arith.cmpi eq, %20, %22 : vector<8x128xi32>
      %c0_i32_14 = arith.constant 0 : i32
      %24 = vector.broadcast %c0_i32_14 : i32 to vector<8x128xi32>
      %25 = arith.cmpi eq, %21, %24 : vector<8x128xi32>
      %26 = arith.andi %23, %25 : vector<8x128xi1>
      %cst_15 = arith.constant 0.000000e+00 : f32
      %27 = vector.broadcast %19 : f32 to vector<8x128xf32>
      %28 = vector.broadcast %cst_15 : f32 to vector<8x128xf32>
      %29 = arith.select %26, %27, %28 : vector<8x128xi1>, vector<8x128xf32>
      %c0_16 = arith.constant 0 : index
      %c0_17 = arith.constant 0 : index
      %30 = vector.load %arg4[%c0_16, %c0_17] : memref<8x128xf32, #tpu.memory_space<vmem>>, vector<8x128xf32>
      tpu.vector_store %arg4[%c0_16, %c0_17], %29 {strides = array<i32>} : memref<8x128xf32, #tpu.memory_space<vmem>>, vector<8x128xf32>,
    } else {
    }
    return
  }
  func.func @transform_0(%arg0: i32, %arg1: i32) -> (i32, i32) {
    %c0_i32 = arith.constant 0 : i32
    %c0_i32_0 = arith.constant 0 : i32
    %c0_i32_1 = arith.constant 0 : i32
    return %c0_i32, %c0_i32_0 : i32, i32
  }
  func.func @transform_1(%arg0: i32, %arg1: i32) -> (i32, i32) {
    %c0_i32 = arith.constant 0 : i32
    %c0_i32_0 = arith.constant 0 : i32
    %c0_i32_1 = arith.constant 0 : i32
    return %c0_i32, %c0_i32_0 : i32, i32
  }
  func.func @transform_2(%arg0: i32, %arg1: i32) -> (i32, i32) {
    %c0_i32 = arith.constant 0 : i32
    %c0_i32_0 = arith.constant 0 : i32
    return %arg0, %c0_i32 : i32, i32
  }
}

</mosaic_0001>

<bundles_post_ra>
// kernel: tpu_custom_call.1
= control target key start
LH: loop header
LB: loop body
LE: loop exit
PB: predicated region body
PF: predicated region fallthrough
CT: control target
= control target key end

     0   :  { %7 = vsyncpa [#allocation4], 0  ;;  %s176_s0 = inlined_call_operand.hbm [shape: f32[2,128], index: 0, kind: input, shape index: {}]   ;;  %s177_s1 = inlined_call_operand.vmem [shape: s32[2,128], index: 1, kind: input, shape index: {}]   ;;  %s178_s2 = inlined_call_operand.hbm [shape: f32[8,128], index: 2, kind: output, shape index: {}]  }
   0x1   :  { %8 = vsyncpa [#allocation5], 0  ;;  %s131_s9 = smov [#allocation3]   ;;  %s83_s13 = scalar_lea.hbm %s176_s0, 32 }
   0x2   :  { %s15_s10 = sshll.u32 %s131_s9, 4  ;;  %p84_p0 = scmp.ne.s32.totalorder %s176_s0, %s83_s13  ;;  %s16_s10 = int_to_ptr.vmem [resolvable:$true] %s15_s10 }
   0x3   :  { %p87_p1 = scmp.lt.u32.totalorder %s83_s13, %s176_s0 }
   0x5   :  { %p89_p2 = pnand %p87_p1, %p84_p0 }
   0x7   :  { %92 = shalt.err (!%p89_p2)
}
   0x8   :  { %s93_s18 = scalar_lea.vmem %s16_s10, 32  ;;  %p98_p4 = scmp.lt.s32.totalorder %s16_s10, %s16_s10 }
   0x9   :  { %p94_p3 = scmp.ne.s32.totalorder %s16_s10, %s93_s18  ;;  %p99_p5 = scmp.lt.s32.totalorder %s93_s18, %s93_s18 }
   0xb   :  { %p100_p6 = por %p99_p5, %p98_p4 }
   0xd   :  { %p101_p7 = pnand %p100_p6, %p94_p3 }
   0xf   :  { %104 = shalt.err (!%p101_p7)
}
  0x10   :  { %18 = dma.hbm_to_vmem [thread:$0]  %s176_s0, 32, %s16_s10, [#allocation4]  }
  0x11   :  { %127 = dma.done.wait [#allocation4], 32  }
  0x12   :  { %128 = vsyncadd [#allocation4], 4294967264  ;;  %v132_v0 = vmov 0.0   ;;  %v29_v1 = vld [vmem:[#allocation3] sm:$0x3]  ;;  %vm41_vm0 = vcmask 1041408   ;;  %v53_v17 = vlaneseq }
  0x13   :  { %28 = vst [vmem:[#allocation2] sm:$0x3] %v132_v0  ;;  %v30_v2 = vld [vmem:[%s177_s1] sm:$0x3]  ;;  %s133_s1 = smov [#allocation6]  }
  0x14   :  { %v31_v3 = vcvt.s32.f32 %v30_v2  ;;  %v54_v18 = vshrl.u32 %v53_v17, 7  ;;  %v56_v19 = vand.u32 127, %v53_v17  ;;  %s69_s23 = sshll.u32 %s133_s1, 4  ;;  %s70_s23 = int_to_ptr.vmem [resolvable:$true] %s69_s23 }
  0x15   :  { %s105_s25 = scalar_lea.vmem %s70_s23, 128  ;;  %p110_p9 = scmp.lt.s32.totalorder %s70_s23, %s70_s23 }
  0x16   :  { %v32_v4 = vsub.f32 %v29_v1, %v31_v3  ;;  %vm57_vm1 = vcmp.eq.s32.totalorder %v54_v18, 0  ;;  %vm58_vm2 = vcmp.eq.s32.totalorder %v56_v19, 0  ;;  %p106_p8 = scmp.ne.s32.totalorder %s70_s23, %s105_s25  ;;  %p111_p10 = scmp.lt.s32.totalorder %s105_s25, %s105_s25 }
  0x17   :  { %vm59_vm3 = vmand %vm57_vm1, %vm58_vm2 }
  0x18   :  { %v33_v6 = vmul.f32 %v32_v4, %v32_v4  ;;  %p112_p11 = por %p111_p10, %p110_p9 }
  0x1a   :  { %v34_v5 = vld [vmem:[#allocation2] sm:$0x3]  ;;  %p113_p12 = pnand %p112_p11, %p106_p8 }
  0x1b   :  { %v35_v7 = vadd.f32 %v34_v5, %v33_v6 }
  0x1d   :  { %36 = vst [vmem:[#allocation2] sm:$0x3] %v35_v7 }
  0x24   :  { %v40_v8 = vld [vmem:[#allocation2] sm:$0x3] }
  0x25   :  { %v42_v9 = vsel %vm41_vm0, %v40_v8, 0.0 }
  0x26   :  { %43 = vadd.xlane.f32.xlu0 %v42_v9 }
  0xb3   :  { %v44_v10 = vpop.xlane.xlu0 %43 }
  0xb4   :  { %v45_v11 = vrot.slane %v44_v10, 4 }
  0xb6   :  { %v46_v12 = vadd.f32 %v45_v11, %v44_v10 }
  0xb8   :  { %v47_v13 = vrot.slane %v46_v12, 2 }
  0xba   :  { %v48_v14 = vadd.f32 %v47_v13, %v46_v12 }
  0xbc   :  { %v49_v15 = vrot.slane %v48_v14, 1 }
  0xbe   :  { %v50_v16 = vadd.f32 %v49_v15, %v48_v14 }
  0xc0   :  { %78 = vpush %v50_v16 }
  0xf1   :  { %s79_s0 = spop %78 }
  0xf2   :  { %s52_s24 = smul.f32 0.00390625, %s79_s0 }
  0xf4   :  { %v60_v20 = vstv %s52_s24 }
  0xf5   :  { %v61_v21 = vsel %vm59_vm3, %v60_v20, 0.0 }
  0xf6   :  { %62 = vst [vmem:[#allocation6] sm:$0xff] %v61_v21 }
  0xf7   :  { %116 = shalt.err (!%p113_p12)
}
  0xf8   :  { %s117_s28 = scalar_lea.hbm %s178_s2, 128 }
  0xf9   :  { %p118_p13 = scmp.ne.s32.totalorder %s178_s2, %s117_s28  ;;  %p121_p0 = scmp.lt.u32.totalorder %s117_s28, %s178_s2 }
  0xfb   :  { %p123_p1 = pnand %p121_p0, %p118_p13 }
  0xfd   :  { %126 = shalt.err (!%p123_p1)
}
  0xfe   :  { %72 = dma.vmem_to_hbm [thread:$0]  %s70_s23, 128, %s178_s2, [#allocation5]  }
  0xff   :  { %129 = dma.done.wait [#allocation5], 128  }
 0x100   :  { %130 = vsyncadd [#allocation5], 4294967168 }
 0x101   :  { %76 = vsyncpa [#allocation4], 1 }
 0x102   :  { %77 = vsyncpa [#allocation5], 1 }

</bundles_post_ra>
